<compile_context>
chip_gen: v7x
topology: tpu7x:2x2x1
jax: 0.10.0
libtpu: 0.0.40
codegen_flags: <defaults>
</compile_context>

<pallas_src>
import functools

import numpy as np
import jax
import jax.numpy as jnp
from jax import lax
from jax.experimental import pallas as pl
from jax.experimental.pallas import tpu as pltpu

# ---------------------------------------------------------------------------
# Network configuration (mirrors ConvLayers.__init__):  (Cin, Cout, K, stride)
# ---------------------------------------------------------------------------
LAYER_CFG = [
    (1, 5, 5, 2),
    (5, 3, 3, 2),
    (3, 1, 1, 1),
]

LANE = 128          # lane width: pad matmul dims to multiples of this
SUBLANE = 8
MAX_BATCH_TILE = 256


def _round_up(x, m):
    return ((x + m - 1) // m) * m


def init_params(key):
    """PyTorch-default-style init: U(-sqrt(k), sqrt(k)), k = 1/(Cin*K). Returns numpy."""
    params = []
    for (cin, cout, k, _stride) in LAYER_CFG:
        key, kw, kb = jax.random.split(key, 3)
        bound = 1.0 / np.sqrt(cin * k)
        w = jax.random.uniform(kw, (cout, cin, k), jnp.float32, -bound, bound)
        b = jax.random.uniform(kb, (cout,), jnp.float32, -bound, bound)
        params.append((np.asarray(w), np.asarray(b)))
    return params


# ---------------------------------------------------------------------------
# Host-side (setup-time) lowering: Conv1d -> banded matrix, then fuse all layers
# ---------------------------------------------------------------------------
def _conv1d_as_matmul(w, b, l_in, stride):
    """y_flat = x_flat @ W_mat + b_flat with channel-major flattening (c*L + t).

    W_mat[ci*Lin + (t*stride + k), co*Lout + t] = w[co, ci, k]
    """
    cout, cin, k = w.shape
    l_out = (l_in - k) // stride + 1
    m = np.zeros((cin, l_in, cout, l_out), np.float64)
    t = np.arange(l_out)
    for kk in range(k):                      # tiny loops (k<=5, cout<=5, cin<=5)
        for co in range(cout):
            for ci in range(cin):
                m[ci, kk + stride * t, co, t] = w[co, ci, kk]
    w_mat = m.reshape(cin * l_in, cout * l_out)
    b_flat = np.repeat(b.astype(np.float64), l_out)
    return w_mat, b_flat, l_out


def build_fused_operator(params, l0):
    """Fold conv1∘conv2∘conv3 into one lane-padded matrix + bias row (done once, host-side)."""
    w_tot, b_tot, l_cur = None, None, l0
    for (w, b), (_ci, _co, _k, stride) in zip(params, LAYER_CFG):
        w_mat, b_flat, l_cur = _conv1d_as_matmul(
            np.asarray(w, np.float64), np.asarray(b, np.float64), l_cur, stride)
        if w_tot is None:
            w_tot, b_tot = w_mat, b_flat
        else:
            b_tot = b_tot @ w_mat + b_flat
            w_tot = w_tot @ w_mat

    k_in, n_valid = w_tot.shape              # (Cin0*L0, Cout_final*Lout_final)
    k_pad = _round_up(max(k_in, LANE), LANE)
    n_pad = _round_up(max(n_valid, LANE), LANE)

    w_pad = np.zeros((k_pad, n_pad), np.float32)
    w_pad[:k_in, :n_valid] = w_tot.astype(np.float32)
    b_pad = np.zeros((1, n_pad), np.float32)
    b_pad[0, :n_valid] = b_tot.astype(np.float32)

    return {
        "w": jnp.asarray(w_pad),             # uploaded once, reused every call
        "b": jnp.asarray(b_pad),
        "l_in": l0,
        "k_in": k_in,
        "k_pad": k_pad,
        "n_valid": n_valid,
        "cout": LAYER_CFG[-1][1],
        "l_out": l_cur,
    }


# ---------------------------------------------------------------------------
# Pallas kernel: one lane-dense MXU matmul + bias add per batch tile
# ---------------------------------------------------------------------------
def fused_conv_kernel(x_ref, w_ref, b_ref, o_ref):
    # x_ref: (TB, K_pad), w_ref: (K_pad, N_pad), b_ref: (1, N_pad), o_ref: (TB, N_pad)
    o_ref[...] = (
        jnp.dot(x_ref[...], w_ref[...], preferred_element_type=jnp.float32)
        + b_ref[...]
    )


@functools.partial(jax.jit, static_argnames=("tb",))
def _fused_forward(x_flat, w_pad, b_pad, tb):
    bp, k_pad = x_flat.shape
    n_pad = w_pad.shape[1]
    grid = (bp // tb,)
    flops = 2 * bp * k_pad * n_pad
    return pl.pallas_call(
        fused_conv_kernel,
        out_shape=jax.ShapeDtypeStruct((bp, n_pad), jnp.float32),
        grid_spec=pltpu.PrefetchScalarGridSpec(
            num_scalar_prefetch=0,
            grid=grid,
            in_specs=[
                pl.BlockSpec((tb, k_pad), lambda i: (i, 0)),     # batch tile (pipelined)
                pl.BlockSpec((k_pad, n_pad), lambda i: (0, 0)),  # fused weight (resident)
                pl.BlockSpec((1, n_pad), lambda i: (0, 0)),      # bias (resident)
            ],
            out_specs=pl.BlockSpec((tb, n_pad), lambda i: (i, 0)),
        ),
        compiler_params=pltpu.CompilerParams(
            dimension_semantics=("parallel",)),                  # 2 TCs on v7x
        cost_estimate=pl.CostEstimate(
            flops=flops,
            transcendentals=0,
            bytes_accessed=4 * (bp * k_pad + k_pad * n_pad + n_pad + bp * n_pad)),
    )(x_flat, w_pad, b_pad)


# ---------------------------------------------------------------------------
# Forward wrapper: faithful port of ConvLayers.forward (numpy input, NCL output)
# ---------------------------------------------------------------------------
def conv_layers_forward(x_np, fused):
    # torch.from_numpy(X).float() + dim handling
    x = np.asarray(x_np, np.float32)
    if x.ndim == 1:
        x = x[None, None, :]      # (1, 1, L)
    elif x.ndim == 2:
        x = x[:, None, :]         # (B, 1, L)
    b, cin0, l0 = x.shape
    assert cin0 == LAYER_CFG[0][0] and l0 == fused["l_in"]

    tb = min(MAX_BATCH_TILE, _round_up(max(b, SUBLANE), SUBLANE))
    bp = _round_up(b, tb)

    # Lane-/sublane-padded, channel-major flattened activations.
    x_flat = np.zeros((bp, fused["k_pad"]), np.float32)
    x_flat[:b, :fused["k_in"]] = x.reshape(b, fused["k_in"])

    out_pad = _fused_forward(jnp.asarray(x_flat), fused["w"], fused["b"], tb)
    out = out_pad[:b, :fused["n_valid"]].reshape(b, fused["cout"], fused["l_out"])
    return out                     # NCL, matches torch output


# ---------------------------------------------------------------------------
# Pure-JAX reference (sequential convs, highest precision) for correctness check
# ---------------------------------------------------------------------------
def reference_forward(x_np, params):
    x = jnp.asarray(np.asarray(x_np), jnp.float32)
    if x.ndim == 1:
        x = x[None, None, :]
    elif x.ndim == 2:
        x = x[:, None, :]
    h = x
    for (w, bias), (_ci, _co, _k, stride) in zip(params, LAYER_CFG):
        h = lax.conv_general_dilated(
            h, jnp.asarray(w), window_strides=(stride,), padding="VALID",
            dimension_numbers=("NCH", "OIH", "NCH"),
            precision=lax.Precision.HIGHEST)
        h = h + jnp.asarray(bias)[None, :, None]
    return h


if __name__ == "__main__":
    key = jax.random.PRNGKey(0)
    key, kx = jax.random.split(key)

    params = init_params(key)

    # Small deterministic input consistent with the module: 2D numpy -> (B, 1, L)
    B, L = 2, 64
    x_np = np.asarray(jax.random.normal(kx, (B, L), jnp.float32))

    # Setup-time fusion (once), then run the Pallas kernel.
    fused = build_fused_operator(params, L)
    out = jax.block_until_ready(conv_layers_forward(x_np, fused))

    ref = jax.block_until_ready(reference_forward(x_np, params))

    assert out.shape == ref.shape == (B, 1, 14), (out.shape, ref.shape)
    # Default MXU precision (bf16-class passes, f32 accumulate): slightly looser tolerance.
    np.testing.assert_allclose(np.asarray(out), np.asarray(ref), rtol=5e-3, atol=2e-3)

    print("KERNEL_OK")
</pallas_src>

<mosaic_0001>
module attributes {stable_mosaic.version = 11 : i64} {
  func.func @fused_conv_kernel(%arg0: i32, %arg1: memref<8x128xf32, #tpu.memory_space<vmem>>, %arg2: memref<128x128xf32, #tpu.memory_space<vmem>>, %arg3: memref<1x128xf32, #tpu.memory_space<vmem>>, %arg4: memref<8x128xf32, #tpu.memory_space<vmem>>) attributes {dimension_semantics = [#tpu.dimension_semantics<parallel>], iteration_bounds = array<i64: 1>, scalar_prefetch = 0 : i64, scratch_operands = 0 : i64, tpu.core_type = #tpu.core_type<tc>, window_params = [{transform_indices = @transform_0, window_bounds = array<i64: 8, 128>}, {pipeline_mode = #tpu.pipeline_mode<synchronous>, transform_indices = @transform_1, window_bounds = array<i64: 128, 128>}, {pipeline_mode = #tpu.pipeline_mode<synchronous>, transform_indices = @transform_2, window_bounds = array<i64: 1, 128>}, {transform_indices = @transform_3, window_bounds = array<i64: 8, 128>}]} {
    %c0 = arith.constant 0 : index
    %c0_0 = arith.constant 0 : index
    %0 = vector.load %arg1[%c0, %c0_0] : memref<8x128xf32, #tpu.memory_space<vmem>>, vector<8x128xf32>
    %c0_1 = arith.constant 0 : index
    %c0_2 = arith.constant 0 : index
    %1 = vector.load %arg2[%c0_1, %c0_2] : memref<128x128xf32, #tpu.memory_space<vmem>>, vector<128x128xf32>
    %cst = arith.constant dense<0.000000e+00> : vector<8x128xf32>
    %2 = tpu.matmul %0, %1, %cst {dimension_numbers = #tpu.dot_dimension_numbers<[1], [0], [0], [1], [0, 0, 1, 1], [], []>} : vector<8x128xf32>, vector<128x128xf32>, vector<8x128xf32> -> vector<8x128xf32>
    %c0_3 = arith.constant 0 : index
    %c0_4 = arith.constant 0 : index
    %3 = vector.load %arg3[%c0_3, %c0_4] : memref<1x128xf32, #tpu.memory_space<vmem>>, vector<1x128xf32>
    %4 = vector.broadcast %3 : vector<1x128xf32> to vector<8x128xf32>
    %5 = arith.addf %2, %4 : vector<8x128xf32>
    %c0_5 = arith.constant 0 : index
    %c0_6 = arith.constant 0 : index
    %6 = vector.load %arg4[%c0_5, %c0_6] : memref<8x128xf32, #tpu.memory_space<vmem>>, vector<8x128xf32>
    tpu.vector_store %arg4[%c0_5, %c0_6], %5 {strides = array<i32>} : memref<8x128xf32, #tpu.memory_space<vmem>>, vector<8x128xf32>,
    return
  }
  func.func @transform_0(%arg0: i32) -> (i32, i32) {
    %c0_i32 = arith.constant 0 : i32
    %c0_i32_0 = arith.constant 0 : i32
    return %arg0, %c0_i32 : i32, i32
  }
  func.func @transform_1(%arg0: i32) -> (i32, i32) {
    %c0_i32 = arith.constant 0 : i32
    %c0_i32_0 = arith.constant 0 : i32
    %c0_i32_1 = arith.constant 0 : i32
    return %c0_i32, %c0_i32_0 : i32, i32
  }
  func.func @transform_2(%arg0: i32) -> (i32, i32) {
    %c0_i32 = arith.constant 0 : i32
    %c0_i32_0 = arith.constant 0 : i32
    %c0_i32_1 = arith.constant 0 : i32
    return %c0_i32, %c0_i32_0 : i32, i32
  }
  func.func @transform_3(%arg0: i32) -> (i32, i32) {
    %c0_i32 = arith.constant 0 : i32
    %c0_i32_0 = arith.constant 0 : i32
    return %arg0, %c0_i32 : i32, i32
  }
}

</mosaic_0001>

<bundles_post_ra>
// kernel: _fused_forward.1
= control target key start
LH: loop header
LB: loop body
LE: loop exit
PB: predicated region body
PF: predicated region fallthrough
CT: control target
= control target key end

     0   :  { %8 = vsyncpa [#allocation3], 0  ;;  %s383_s0 = inlined_call_operand.hbm [shape: f32[8,128], index: 0, kind: input, shape index: {}]   ;;  %s384_s1 = inlined_call_operand.hbm [shape: f32[128,128], index: 1, kind: input, shape index: {}]   ;;  %s385_s2 = inlined_call_operand.vmem [shape: f32[1,128], index: 2, kind: input, shape index: {}]   ;;  %s386_s3 = inlined_call_operand.hbm [shape: f32[8,128], index: 3, kind: output, shape index: {}]  }
   0x1   :  { %9 = vsyncpa [#allocation6], 0 }
   0x2   :  { %10 = vsyncpa [#allocation4], 0  ;;  %s309_s12 = smov [#allocation2]   ;;  %s310_s14 = smov [#allocation5]  }
   0x3   :  { %s17_s13 = sshll.u32 %s309_s12, 4  ;;  %s26_s15 = sshll.u32 %s310_s14, 4  ;;  %s18_s13 = int_to_ptr.vmem [resolvable:$true] %s17_s13  ;;  %s337_s15 = int_to_ptr.vmem [resolvable:$true] %s26_s15 }
   0x4   :  { %s237_s18 = scalar_lea.hbm %s383_s0, 128 }
   0x5   :  { %p238_p0 = scmp.ne.s32.totalorder %s383_s0, %s237_s18  ;;  %p241_p1 = scmp.lt.u32.totalorder %s237_s18, %s383_s0 }
   0x7   :  { %p243_p2 = pnand %p241_p1, %p238_p0 }
   0x9   :  { %246 = shalt.err (!%p243_p2)
}
   0xa   :  { %s247_s23 = scalar_lea.vmem %s18_s13, 128  ;;  %p252_p4 = scmp.lt.s32.totalorder %s18_s13, %s18_s13 }
   0xb   :  { %p248_p3 = scmp.ne.s32.totalorder %s18_s13, %s247_s23  ;;  %p253_p5 = scmp.lt.s32.totalorder %s247_s23, %s247_s23 }
   0xd   :  { %p254_p6 = por %p253_p5, %p252_p4 }
   0xf   :  { %p255_p7 = pnand %p254_p6, %p248_p3 }
  0x11   :  { %258 = shalt.err (!%p255_p7)
}
  0x12   :  { %20 = dma.hbm_to_vmem [thread:$0]  %s383_s0, 128, %s18_s13, [#allocation3]  }
  0x13   :  { %s259_s28 = scalar_lea.hbm %s384_s1, 2048 }
  0x14   :  { %p260_p8 = scmp.ne.s32.totalorder %s384_s1, %s259_s28  ;;  %p263_p9 = scmp.lt.u32.totalorder %s259_s28, %s384_s1 }
  0x16   :  { %p265_p10 = pnand %p263_p9, %p260_p8 }
  0x18   :  { %268 = shalt.err (!%p265_p10)
}
  0x19   :  { %s269_s6 = scalar_lea.vmem %s337_s15, 2048  ;;  %p274_p12 = scmp.lt.s32.totalorder %s337_s15, %s337_s15 }
  0x1a   :  { %p270_p11 = scmp.ne.s32.totalorder %s337_s15, %s269_s6  ;;  %p275_p13 = scmp.lt.s32.totalorder %s269_s6, %s269_s6 }
  0x1c   :  { %p276_p0 = por %p275_p13, %p274_p12 }
  0x1e   :  { %p277_p1 = pnand %p276_p0, %p270_p11 }
  0x20   :  { %280 = shalt.err (!%p277_p1)
}
  0x21   :  { %s311_s0 = smov 128   ;;  %s312_s7 = smov 8  }
  0x22   :  { %32 = dma.hbm_to_vmem [thread:$0]  %s384_s1, 2048, %s337_s15, [#allocation6], %s311_s0, %s311_s0, %s312_s7  }
  0x23   :  { %303 = dma.done.wait [#allocation3], 128  }
  0x24   :  { %304 = vsyncadd [#allocation3], 4294967168 }
  0x25   :  { %305 = dma.done.wait [#allocation6], 2048  }
  0x26   :  { %306 = vsyncadd [#allocation6], 4294965248  ;;  %v313_v0 = vmov 0.0|0.0   ;;  %vm314_vm0 = vmmov 0   ;;  %v315_v1 = vmov 0.0   ;;  %v42_v2 = vld [vmem:[#allocation5] sm:$0xff] }
  0x27   :  { %205 = vmatprep.subr.bf16.mxu0 %v313_v0  ;;  %202 = vmatprep.mubr.msk.f32.mxu0 %vm314_vm0, %v315_v1  ;;  %v43_v3 = vld [vmem:[#allocation5 + $0x8] sm:$0xff]  ;;  %v44_v4 = vld [vmem:[#allocation5 + $0x10] sm:$0xff]  ;;  %v45_v6 = vld [vmem:[#allocation5 + $0x18] sm:$0xff]  ;;  %s316_s11 = smov [#allocation7]  }
  0x28   :  { %v206_v5 = vpack.c.bf16 %v43_v3, %v42_v2  ;;  %v209_v7 = vpack.c.bf16 %v45_v6, %v44_v4  ;;  %v46_v8 = vld [vmem:[#allocation5 + $0x20] sm:$0xff]  ;;  %v47_v9 = vld [vmem:[#allocation5 + $0x28] sm:$0xff]  ;;  %v48_v11 = vld [vmem:[#allocation5 + $0x30] sm:$0xff]  ;;  %s142_s12 = sshll.u32 %s316_s11, 4  ;;  %s143_s12 = int_to_ptr.vmem [resolvable:$true] %s142_s12 }
  0x29   :  { %v212_v10 = vpack.c.bf16 %v47_v9, %v46_v8  ;;  %v49_v12 = vld [vmem:[#allocation5 + $0x38] sm:$0xff]  ;;  %v50_v14 = vld [vmem:[#allocation5 + $0x40] sm:$0xff]  ;;  %v51_v15 = vld [vmem:[#allocation5 + $0x48] sm:$0xff]  ;;  %s281_s13 = scalar_lea.vmem %s143_s12, 128  ;;  %p286_p3 = scmp.lt.s32.totalorder %s143_s12, %s143_s12 }
  0x2a   :  { %207 = vmatpush3.bf16.msra.mxu0 %v206_v5  ;;  %v215_v13 = vpack.c.bf16 %v49_v12, %v48_v11  ;;  %v218_v16 = vpack.c.bf16 %v51_v15, %v50_v14  ;;  %v52_v17 = vld [vmem:[#allocation5 + $0x50] sm:$0xff]  ;;  %v53_v18 = vld [vmem:[#allocation5 + $0x58] sm:$0xff]  ;;  %v54_v20 = vld [vmem:[#allocation5 + $0x60] sm:$0xff]  ;;  %p282_p2 = scmp.ne.s32.totalorder %s143_s12, %s281_s13  ;;  %p287_p4 = scmp.lt.s32.totalorder %s281_s13, %s281_s13 }
  0x2b   :  { %208 = vmatprep.subr.bf16.mxu0 %v313_v0  ;;  %v221_v19 = vpack.c.bf16 %v53_v18, %v52_v17  ;;  %v55_v21 = vld [vmem:[#allocation5 + $0x68] sm:$0xff]  ;;  %v56_v23 = vld [vmem:[#allocation5 + $0x70] sm:$0xff]  ;;  %v57_v24 = vld [vmem:[#allocation5 + $0x78] sm:$0xff] }
  0x2c   :  { %v224_v22 = vpack.c.bf16 %v55_v21, %v54_v20  ;;  %v227_v25 = vpack.c.bf16 %v57_v24, %v56_v23  ;;  %v41_v26 = vld [vmem:[#allocation2] sm:$0xff]  ;;  %p288_p5 = por %p287_p4, %p286_p3 }
  0x2d   :  { %v152_v27 = vld [vmem:[%s385_s2] ss:$0 sm:$0xff] }
  0x2e   :  { %210 = vmatpush3.bf16.msra.mxu0 %v209_v7  ;;  %p289_p6 = pnand %p288_p5, %p282_p2 }
  0x2f   :  { %211 = vmatprep.subr.bf16.mxu0 %v313_v0 }
  0x32   :  { %213 = vmatpush3.bf16.msra.mxu0 %v212_v10 }
  0x33   :  { %214 = vmatprep.subr.bf16.mxu0 %v313_v0 }
  0x36   :  { %216 = vmatpush3.bf16.msra.mxu0 %v215_v13 }
  0x37   :  { %217 = vmatprep.subr.bf16.mxu0 %v313_v0 }
  0x3a   :  { %219 = vmatpush3.bf16.msra.mxu0 %v218_v16 }
  0x3b   :  { %220 = vmatprep.subr.bf16.mxu0 %v313_v0 }
  0x3e   :  { %222 = vmatpush3.bf16.msra.mxu0 %v221_v19 }
  0x3f   :  { %223 = vmatprep.subr.bf16.mxu0 %v313_v0 }
  0x42   :  { %225 = vmatpush3.bf16.msra.mxu0 %v224_v22 }
  0x43   :  { %226 = vmatprep.subr.bf16.mxu0 %v313_v0 }
  0x46   :  { %228 = vmatpush3.bf16.msra.mxu0 %v227_v25 }
  0x49   :  { %203 = vmatmul.mubr.f32.vlgmr.msra.gmra.mrb[0].mxu0 %v41_v26 }
 0x11c   :  { %v131_v28 = vpop.f32.mrb[0].mxu0 }
 0x11d   :  { %v132_v29 = vadd.f32 %v152_v27, %v131_v28  ;;  %v204_v30 = vpop.f32.mrb[1].mxu0 }
 0x11f   :  { %135 = vst [vmem:[#allocation7] sm:$0xff] %v132_v29 }
 0x120   :  { %292 = shalt.err (!%p289_p6)
}
 0x121   :  { %s293_s16 = scalar_lea.hbm %s386_s3, 128 }
 0x122   :  { %p294_p7 = scmp.ne.s32.totalorder %s386_s3, %s293_s16  ;;  %p297_p8 = scmp.lt.u32.totalorder %s293_s16, %s386_s3 }
 0x124   :  { %p299_p9 = pnand %p297_p8, %p294_p7 }
 0x126   :  { %302 = shalt.err (!%p299_p9)
}
 0x127   :  { %145 = dma.vmem_to_hbm [thread:$0]  %s143_s12, 128, %s386_s3, [#allocation4]  }
 0x128   :  { %307 = dma.done.wait [#allocation4], 128  }
 0x129   :  { %308 = vsyncadd [#allocation4], 4294967168 }
 0x12a   :  { %149 = vsyncpa [#allocation3], 1 }
 0x12b   :  { %150 = vsyncpa [#allocation6], 1 }
 0x12c   :  { %151 = vsyncpa [#allocation4], 1 }

</bundles_post_ra>
